<compile_context>
chip_gen: v7x
topology: tpu7x:2x2x1
jax: 0.10.0
libtpu: 0.0.40
codegen_flags: <defaults>
</compile_context>

<pallas_src>
import jax
import jax.numpy as jnp
from jax.experimental import pallas as pl
from jax.experimental.pallas import tpu as pltpu


def _make_se_kernel(channels_on_lanes: bool, use_mxu: bool):
    """Returns a kernel specialized for the chosen layout / matmul path."""

    def kernel(x_ref, w1_ref, b1_ref, w2_ref, b2_ref, o_ref):
        x = x_ref[...]                         # (NB, HW, C) or (NB, C, HW)
        red_axis = 1 if channels_on_lanes else 2

        # --- squeeze: global average pool (accumulate in f32) ----------------
        mean = jnp.mean(x, axis=red_axis, dtype=jnp.float32)       # (NB, C)

        # --- conv_reduce -> ReLU -> conv_expand -> sigmoid --------------------
        if use_mxu:
            # w1_ref: (C, RD), w2_ref: (RD, C)  (pre-transposed in the wrapper)
            h = jnp.dot(mean, w1_ref[...],
                        preferred_element_type=jnp.float32) + b1_ref[...]
            h = jnp.maximum(h, 0.0)                                 # (NB, RD)
            g = jnp.dot(h, w2_ref[...],
                        preferred_element_type=jnp.float32) + b2_ref[...]
        else:
            # Tiny NB: skip the MXU; VPU multiply + lane reduce instead.
            # w1_ref: (RD, C), w2_ref: (C, RD)  (original conv orientation)
            h = jnp.sum(mean[:, None, :] * w1_ref[...][None, :, :],
                        axis=-1) + b1_ref[...]                      # (NB, RD)
            h = jnp.maximum(h, 0.0)
            g = jnp.sum(h[:, None, :] * w2_ref[...][None, :, :],
                        axis=-1) + b2_ref[...]                      # (NB, C)

        gate = jax.nn.sigmoid(g).astype(x.dtype)                    # (NB, C)

        # --- excite: broadcast multiply over the spatial axis -----------------
        if channels_on_lanes:
            o_ref[...] = (x * gate[:, None, :]).astype(o_ref.dtype)
        else:
            o_ref[...] = (x * gate[:, :, None]).astype(o_ref.dtype)

    return kernel


def _pick_batch_block(n, slab_bytes, vmem_budget_bytes):
    """Largest divisor of n whose double-buffered in+out slabs fit the budget,
    while keeping >= 2 grid steps (when n allows) for megacore sharding."""
    max_nb_vmem = max(1, vmem_budget_bytes // (4 * slab_bytes))
    cap = max(1, n // 2) if n >= 2 else 1
    target = min(max_nb_vmem, cap, n)
    nb = 1
    for d in range(1, n + 1):
        if n % d == 0 and d <= target:
            nb = d
    return nb


def squeeze_excite(x_nchw, w_reduce, b_reduce, w_expand, b_expand,
                   *, vmem_budget_bytes=24 * 1024 * 1024):
    """x_nchw: (N, C, H, W); w_reduce: (RD, C); w_expand: (C, RD)."""
    N, C, H, W = x_nchw.shape
    HW = H * W
    RD = w_reduce.shape[0]
    dtype = x_nchw.dtype
    itemsize = jnp.dtype(dtype).itemsize

    # Layout: the lane axis should be a large multiple of 128 for dense stores.
    channels_on_lanes = (HW % 128 != 0) and (C % 128 == 0)
    if channels_on_lanes:
        x = x_nchw.reshape(N, C, HW).transpose(0, 2, 1)    # (N, HW, C)
        blk_tail = (HW, C)
    else:
        x = x_nchw.reshape(N, C, HW)                       # (N, C, HW)
        blk_tail = (C, HW)

    nb = _pick_batch_block(N, C * HW * itemsize, vmem_budget_bytes)
    grid = (N // nb,)
    blk = (nb,) + blk_tail

    # The MXU only pays off once the batched matmul has a few sublane rows.
    use_mxu = nb >= 8
    if use_mxu:
        w1_arg = jnp.transpose(w_reduce)     # (C, RD)
        w2_arg = jnp.transpose(w_expand)     # (RD, C)
    else:
        w1_arg = w_reduce                    # (RD, C)
        w2_arg = w_expand                    # (C, RD)
    b1 = b_reduce.reshape(1, RD)
    b2 = b_expand.reshape(1, C)

    kernel = _make_se_kernel(channels_on_lanes, use_mxu)

    cost = pl.CostEstimate(
        flops=2 * N * C * HW + 4 * N * C * RD + 2 * N * C,
        transcendentals=N * C,                          # sigmoid
        bytes_accessed=2 * N * C * HW * itemsize,       # x read once + write once
    )

    out = pl.pallas_call(
        kernel,
        out_shape=jax.ShapeDtypeStruct(x.shape, dtype),
        grid_spec=pltpu.PrefetchScalarGridSpec(
            num_scalar_prefetch=0,
            grid=grid,
            in_specs=[
                pl.BlockSpec(blk, lambda n: (n, 0, 0)),            # x slab
                pl.BlockSpec(w1_arg.shape, lambda n: (0, 0)),      # reduce weight
                pl.BlockSpec((1, RD), lambda n: (0, 0)),           # reduce bias
                pl.BlockSpec(w2_arg.shape, lambda n: (0, 0)),      # expand weight
                pl.BlockSpec((1, C), lambda n: (0, 0)),            # expand bias
            ],
            out_specs=pl.BlockSpec(blk, lambda n: (n, 0, 0)),
        ),
        compiler_params=pltpu.CompilerParams(
            dimension_semantics=("parallel",),
            # Double-buffered slabs are budgeted to <= 24 MiB; 32 MiB scoped
            # VMEM is safe on v5e/v6e (128 MiB phys) and v7x (64 MiB phys),
            # and above v5e's 16 MiB scoped default.
            vmem_limit_bytes=32 * 1024 * 1024,
        ),
        cost_estimate=cost,
    )(x, w1_arg, b1, w2_arg, b2)

    if channels_on_lanes:
        out = out.transpose(0, 2, 1)
    return out.reshape(N, C, H, W)


def squeeze_excite_ref(x, w1, b1, w2, b2):
    """Pure-JAX reference matching the PyTorch module exactly."""
    x_se = x.mean(axis=(2, 3), keepdims=True)                       # (N,C,1,1)
    x_se = jnp.einsum('rc,ncij->nrij', w1, x_se) + b1[None, :, None, None]
    x_se = jnp.maximum(x_se, 0.0)                                   # ReLU
    x_se = jnp.einsum('cr,nrij->ncij', w2, x_se) + b2[None, :, None, None]
    return x * jax.nn.sigmoid(x_se)                                 # gate


if __name__ == "__main__":
    # Module hyperparameters (small, consistent with the forward pass):
    #   in_chs=8, rd_ratio=0.25 -> rd_channels = round(8 * 0.25) = 2
    N, C, H, W = 2, 8, 16, 16
    RD = round(C * 0.25)

    key = jax.random.PRNGKey(0)
    kx, kw1, kb1, kw2, kb2 = jax.random.split(key, 5)

    x = jax.random.normal(kx, (N, C, H, W), dtype=jnp.float32)
    # nn.Conv2d(in_chs, rd, 1) weight is (RD, C, 1, 1) -> stored squeezed (RD, C)
    w_reduce = jax.random.normal(kw1, (RD, C), dtype=jnp.float32) * 0.1
    b_reduce = jax.random.normal(kb1, (RD,), dtype=jnp.float32) * 0.1
    # nn.Conv2d(rd, in_chs, 1) weight is (C, RD, 1, 1) -> stored squeezed (C, RD)
    w_expand = jax.random.normal(kw2, (C, RD), dtype=jnp.float32) * 0.1
    b_expand = jax.random.normal(kb2, (C,), dtype=jnp.float32) * 0.1

    out = squeeze_excite(x, w_reduce, b_reduce, w_expand, b_expand)
    out = jax.block_until_ready(out)

    ref = squeeze_excite_ref(x, w_reduce, b_reduce, w_expand, b_expand)
    assert out.shape == (N, C, H, W)
    assert jnp.allclose(out, ref, atol=1e-5, rtol=1e-5), "mismatch vs reference"

    print("KERNEL_OK")
</pallas_src>

<mosaic_0001>
module attributes {stable_mosaic.version = 11 : i64} {
  func.func @kernel(%arg0: i32, %arg1: memref<1x8x256xf32, #tpu.memory_space<vmem>>, %arg2: memref<2x8xf32, #tpu.memory_space<vmem>>, %arg3: memref<1x2xf32, #tpu.memory_space<vmem>>, %arg4: memref<8x2xf32, #tpu.memory_space<vmem>>, %arg5: memref<1x8xf32, #tpu.memory_space<vmem>>, %arg6: memref<1x8x256xf32, #tpu.memory_space<vmem>>) attributes {dimension_semantics = [#tpu.dimension_semantics<parallel>], iteration_bounds = array<i64: 2>, scalar_prefetch = 0 : i64, scratch_operands = 0 : i64, tpu.core_type = #tpu.core_type<tc>, window_params = [{transform_indices = @transform_0, window_bounds = array<i64: 1, 8, 256>}, {pipeline_mode = #tpu.pipeline_mode<synchronous>, transform_indices = @transform_1, window_bounds = array<i64: 2, 8>}, {pipeline_mode = #tpu.pipeline_mode<synchronous>, transform_indices = @transform_2, window_bounds = array<i64: 1, 2>}, {pipeline_mode = #tpu.pipeline_mode<synchronous>, transform_indices = @transform_3, window_bounds = array<i64: 8, 2>}, {pipeline_mode = #tpu.pipeline_mode<synchronous>, transform_indices = @transform_4, window_bounds = array<i64: 1, 8>}, {transform_indices = @transform_5, window_bounds = array<i64: 1, 8, 256>}]} {
    %c0 = arith.constant 0 : index
    %c0_0 = arith.constant 0 : index
    %c0_1 = arith.constant 0 : index
    %0 = vector.load %arg1[%c0, %c0_0, %c0_1] : memref<1x8x256xf32, #tpu.memory_space<vmem>>, vector<1x8x256xf32>
    %cst = arith.constant dense<0.000000e+00> : vector<1x8xf32>
    %1 = vector.multi_reduction <add>, %0, %cst [2] : vector<1x8x256xf32> to vector<1x8xf32>
    %cst_2 = arith.constant 2.560000e+02 : f32
    %2 = vector.broadcast %cst_2 : f32 to vector<1x8xf32>
    %3 = arith.divf %1, %2 : vector<1x8xf32>
    %4 = vector.shape_cast %3 : vector<1x8xf32> to vector<1x1x8xf32>
    %c0_3 = arith.constant 0 : index
    %c0_4 = arith.constant 0 : index
    %5 = vector.load %arg2[%c0_3, %c0_4] : memref<2x8xf32, #tpu.memory_space<vmem>>, vector<2x8xf32>
    %6 = vector.shape_cast %5 : vector<2x8xf32> to vector<1x2x8xf32>
    %7 = vector.broadcast %4 : vector<1x1x8xf32> to vector<1x2x8xf32>
    %8 = arith.mulf %7, %6 : vector<1x2x8xf32>
    %cst_5 = arith.constant dense<0.000000e+00> : vector<1x2xf32>
    %9 = vector.multi_reduction <add>, %8, %cst_5 [2] : vector<1x2x8xf32> to vector<1x2xf32>
    %c0_6 = arith.constant 0 : index
    %c0_7 = arith.constant 0 : index
    %10 = vector.load %arg3[%c0_6, %c0_7] : memref<1x2xf32, #tpu.memory_space<vmem>>, vector<1x2xf32>
    %11 = arith.addf %9, %10 : vector<1x2xf32>
    %cst_8 = arith.constant 0.000000e+00 : f32
    %12 = vector.broadcast %cst_8 : f32 to vector<1x2xf32>
    %13 = arith.maximumf %11, %12 : vector<1x2xf32>
    %14 = vector.shape_cast %13 : vector<1x2xf32> to vector<1x1x2xf32>
    %c0_9 = arith.constant 0 : index
    %c0_10 = arith.constant 0 : index
    %15 = vector.load %arg4[%c0_9, %c0_10] : memref<8x2xf32, #tpu.memory_space<vmem>>, vector<8x2xf32>
    %16 = vector.shape_cast %15 : vector<8x2xf32> to vector<1x8x2xf32>
    %17 = vector.broadcast %14 : vector<1x1x2xf32> to vector<1x8x2xf32>
    %18 = arith.mulf %17, %16 : vector<1x8x2xf32>
    %cst_11 = arith.constant dense<0.000000e+00> : vector<1x8xf32>
    %19 = vector.multi_reduction <add>, %18, %cst_11 [2] : vector<1x8x2xf32> to vector<1x8xf32>
    %c0_12 = arith.constant 0 : index
    %c0_13 = arith.constant 0 : index
    %20 = vector.load %arg5[%c0_12, %c0_13] : memref<1x8xf32, #tpu.memory_space<vmem>>, vector<1x8xf32>
    %21 = arith.addf %19, %20 : vector<1x8xf32>
    %22 = arith.negf %21 : vector<1x8xf32>
    %23 = math.exp %22 : vector<1x8xf32>
    %cst_14 = arith.constant 1.000000e+00 : f32
    %24 = vector.broadcast %cst_14 : f32 to vector<1x8xf32>
    %25 = arith.addf %24, %23 : vector<1x8xf32>
    %26 = arith.divf %24, %25 : vector<1x8xf32>
    %27 = vector.shape_cast %26 : vector<1x8xf32> to vector<1x8x1xf32>
    %28 = vector.broadcast %27 : vector<1x8x1xf32> to vector<1x8x256xf32>
    %29 = arith.mulf %0, %28 : vector<1x8x256xf32>
    %c0_15 = arith.constant 0 : index
    %c0_16 = arith.constant 0 : index
    %c0_17 = arith.constant 0 : index
    %30 = vector.load %arg6[%c0_15, %c0_16, %c0_17] : memref<1x8x256xf32, #tpu.memory_space<vmem>>, vector<1x8x256xf32>
    tpu.vector_store %arg6[%c0_15, %c0_16, %c0_17], %29 {strides = array<i32>} : memref<1x8x256xf32, #tpu.memory_space<vmem>>, vector<1x8x256xf32>,
    return
  }
  func.func @transform_0(%arg0: i32) -> (i32, i32, i32) {
    %c0_i32 = arith.constant 0 : i32
    %c0_i32_0 = arith.constant 0 : i32
    %c0_i32_1 = arith.constant 0 : i32
    return %arg0, %c0_i32, %c0_i32_0 : i32, i32, i32
  }
  func.func @transform_1(%arg0: i32) -> (i32, i32) {
    %c0_i32 = arith.constant 0 : i32
    %c0_i32_0 = arith.constant 0 : i32
    %c0_i32_1 = arith.constant 0 : i32
    return %c0_i32, %c0_i32_0 : i32, i32
  }
  func.func @transform_2(%arg0: i32) -> (i32, i32) {
    %c0_i32 = arith.constant 0 : i32
    %c0_i32_0 = arith.constant 0 : i32
    %c0_i32_1 = arith.constant 0 : i32
    return %c0_i32, %c0_i32_0 : i32, i32
  }
  func.func @transform_3(%arg0: i32) -> (i32, i32) {
    %c0_i32 = arith.constant 0 : i32
    %c0_i32_0 = arith.constant 0 : i32
    %c0_i32_1 = arith.constant 0 : i32
    return %c0_i32, %c0_i32_0 : i32, i32
  }
  func.func @transform_4(%arg0: i32) -> (i32, i32) {
    %c0_i32 = arith.constant 0 : i32
    %c0_i32_0 = arith.constant 0 : i32
    %c0_i32_1 = arith.constant 0 : i32
    return %c0_i32, %c0_i32_0 : i32, i32
  }
  func.func @transform_5(%arg0: i32) -> (i32, i32, i32) {
    %c0_i32 = arith.constant 0 : i32
    %c0_i32_0 = arith.constant 0 : i32
    %c0_i32_1 = arith.constant 0 : i32
    return %arg0, %c0_i32, %c0_i32_0 : i32, i32, i32
  }
}

</mosaic_0001>

<bundles_post_ra>
// kernel: tpu_custom_call.1
= control target key start
LH: loop header
LB: loop body
LE: loop exit
PB: predicated region body
PF: predicated region fallthrough
CT: control target
= control target key end

     0   :  { %10 = vsyncpa [#allocation3], 0  ;;  %s974_s0 = inlined_call_operand.hbm [shape: f32[2,8,256], index: 0, kind: input, shape index: {}]   ;;  %s975_s1 = inlined_call_operand.vmem [shape: f32[2,8], index: 1, kind: input, shape index: {}]   ;;  %s976_s2 = inlined_call_operand.vmem [shape: f32[1,2], index: 2, kind: input, shape index: {}]   ;;  %s977_s3 = inlined_call_operand.vmem [shape: f32[8,2], index: 3, kind: input, shape index: {}]   ;;  %s978_s4 = inlined_call_operand.vmem [shape: f32[1,8], index: 4, kind: input, shape index: {}]   ;;  %s979_s5 = inlined_call_operand.hbm [shape: f32[2,8,256], index: 5, kind: output, shape index: {}]  }
   0x1   :  { %12 = vsyncpa [#allocation3 + $0x1], 0 }
   0x2   :  { %13 = vsyncpa [#allocation4], 0 }
   0x3   :  { %15 = vsyncpa [#allocation4 + $0x1], 0  ;;  %s775_s18 = smov 0   ;;  %s777_s19 = smov 0  }
   0x4   :  { %s779_s20 = smov 0   ;;  %s781_s21 = smov 0  }
   0x5 LB: > { %s796_s22 = sadd.s32 4294967295, %s740_s21   ;;  %s572_s23 = sadd.s32 4294967294, %s740_s21   ;;  %s740_s21 = sphi %s781_s21, %s994_s21   ;;  %s736_s20 = sphi %s779_s20, %s993_s20   ;;  %s732_s19 = sphi %s777_s19, %s992_s19   ;;  %s728_s18 = sphi %s775_s18, %s991_s18  }
   0x6   : > { %s800_s24 = sadd.s32 1, %s740_s21   ;;  %s28_s25 = sadd.s32 1, %s736_s20 }
   0x7   : > { %s25_s26 = ssub.s32 %s740_s21, %s800_s24  ;;  %p35_p0 = scmp.ne.s32.totalorder %s736_s20, %s732_s19 }
   0x8   : > { %p26_p1 = scmp.eq.s32.totalorder %s25_s26, 0  ;;  %p36_p2 = scmp.eq.s32.totalorder %s740_s21, 0 }
   0x9   : > { %p41_p3 = scmp.ne.s32.totalorder %s732_s19, %s728_s18  ;;  %p42_p4 = scmp.eq.s32.totalorder %s796_s22, 0 }
   0xa   : > { %s812_s27 = scalar_select %p26_p1, %s736_s20, %s28_s25  }
   0xb   : > { %p814_p5 = por %p36_p2, %p35_p0  ;;  %p818_p6 = por %p42_p4, %p41_p3 }
   0xc   : > { %p149_p7 = scmp.eq.s32.totalorder %s796_s22, 1  ;;  %p155_p8 = scmp.eq.s32.totalorder %s572_s23, 1 }
   0xd   : > { %p603_p10 = scmp.lt.s32.totalorder %s740_s21, 2  ;;  %s187_s7 = sand.u32 1, %s736_s20  }
   0xe   : > { %p825_p11 = por %p149_p7, %p35_p0  ;;  %p829_p12 = por %p155_p8, %p41_p3 }
   0xf   : > { %s589_s8 = sshll.u32 %s740_s21, 8  ;;  %s575_s9 = sshll.u32 %s187_s7, 4 }
  0x10   : > { %s983_s30 = scalar_select %p825_p11, 1, 0 }
  0x11   : > { %s984_s6 = scalar_select %p829_p12, 1, 0 }
  0x12   : > { %s838_s12 = scalar_lea.hbm %s974_s0, %s589_s8  ;;  %s191_s13 = scalar_lea.vmem [#allocation2], %s575_s9 }
  0x13   : > { %s199_s14 = sshll.u32 %s191_s13, 4  ;;  %p842_p13 = pnand %p603_p10, %p814_p5  ;;  %s846_s14 = int_to_ptr.vmem [resolvable:$true] %s199_s14 }
  0x14   : > { %s188_s16 = scalar_lea.sflag [#allocation3], %s187_s7  ;;  %s644_s17 = scalar_lea.hbm %s838_s12, 256 }
  0x15   : > { %p645_p2 = scmp.ne.s32.totalorder %s838_s12, %s644_s17  ;;  %p646_p3 = pneg %p842_p13 }
  0x16   : > { %s649_s26 = scalar_lea.hbm %s974_s0, 512  ;;  %p650_p5 = scmp.lt.u32.totalorder %s838_s12, %s974_s0 }
  0x17   : > { %p647_p4 = pnand %p646_p3, %p645_p2  ;;  %p651_p8 = scmp.lt.u32.totalorder %s649_s26, %s644_s17 }
  0x18   : > { %p653_p9 = scmp.lt.u32.totalorder %s644_s17, %s838_s12 }
  0x19   : > { %p648_p7 = pneg %p647_p4  ;;  %p652_p10 = por %p651_p8, %p650_p5 }
  0x1b   : > { %p654_p0 = por %p653_p9, %p652_p10 }
  0x1d   : > { %p655_p1 = pnand %p654_p0, %p648_p7 }
  0x1f   : > { %658 = shalt.err (!%p655_p1)
}
  0x20   : > { %s659_s7 = scalar_lea.vmem %s846_s14, 256  ;;  %s742_s9 = smov [#allocation2]  }
  0x21   : > { %p660_p2 = scmp.ne.s32.totalorder %s846_s14, %s659_s7  ;;  %s664_s10 = sshll.u32 %s742_s9, 4  ;;  %s665_s10 = int_to_ptr.vmem [resolvable:$false] %s664_s10 }
  0x22   : > { %s666_s11 = scalar_lea.vmem %s665_s10, 512  ;;  %p667_p11 = scmp.lt.s32.totalorder %s846_s14, %s665_s10 }
  0x23   : > { %p662_p4 = pnand %p660_p2, %p646_p3  ;;  %p668_p5 = scmp.lt.s32.totalorder %s666_s11, %s659_s7 }
  0x25   : > { %p663_p12 = pneg %p662_p4  ;;  %p669_p8 = por %p668_p5, %p667_p11 }
  0x27   : > { %p670_p9 = pnand %p669_p8, %p663_p12 }
  0x29   : > { %673 = shalt.err (!%p670_p9)
}
  0x2a   : > { %598 = dma.hbm_to_vmem [thread:$0]  (!%p842_p13), %s838_s12, 256, %s846_s14, %s188_s16  }
  0x2b   : > { %p986_p0 = scmp.lt.s32.totalorder %s740_s21, 3  ;;  %p987_p1 = scmp.ge.s32.totalorder %s740_s21, 1 }
  0x2d   : > { %p205_p3 = pnand %p987_p1, %p986_p0 }
  0x2e   : > { %s880_s13 = sand.u32 (!%p205_p3), 1, %s732_s19  }
  0x2f   : > { %208 = sbr.rel (%p205_p3) target bundleno = 949 (0x3b5), region = 40  ;;  %s579_s17 = sshll.u32 (!%p205_p3), %s880_s13, 4 }
  0x30   : > { %s211_s23 = scalar_lea.sflag (!%p205_p3), [#allocation3], %s880_s13  ;;  %s214_s15 = scalar_lea.vmem (!%p205_p3), [#allocation2], %s579_s17 }
  0x36   : > { %719 = dma.done.wait (%p818_p6), %s211_s23, 256  }
  0x37   : > { %721 = vsyncadd (%p818_p6), %s211_s23, 4294967040  ;;  %v250_v0 = vlaneseq  ;;  %v890_v3 = vld [vmem:[%s214_s15] sm:$0xff]  ;;  %v892_v4 = vld [vmem:[%s214_s15 + $0x8] sm:$0xff]  ;;  %v743_v10 = vmov 0   ;;  %vm286_vm0 = vcmask 1041409   ;;  %vm289_vm1 = vcmask 58368  }
  0x38   : > { %v248_v5 = vld [vmem:[%s975_s1] sm:$0x3]  ;;  %v243_v6 = vadd.f32 %v892_v4, %v890_v3  ;;  %638 = vset.pattern.permute.xlu1 %v743_v10  ;;  %639 = vset.pattern.permute.xlu0 %v743_v10  ;;  %vm444_vm2 = vcmask 1042434   ;;  %vm446_vm3 = vcmask 1043459   ;;  %vm448_vm4 = vcmask 1044484   ;;  %s590_s7 = sshll.u32 %s796_s22, 8 }
  0x39   : > { %v251_v1 = vshrl.u32 %v250_v0, 7  ;;  %v581_v17 = vld [vmem:[%s976_s2] ss:$0 sm:$0xff]  ;;  %v277_v31 = vand.u32 127, %v250_v0  ;;  %vm450_vm5 = vcmask 1045509   ;;  %vm452_vm6 = vcmask 1046534   ;;  %s930_s15 = scalar_lea.hbm %s979_s5, %s590_s7 }
  0x3a   : > { %244 = vadd.xlane.f32.xlu0 %v243_v6  ;;  %v305_v18 = vld [vmem:[%s977_s3] sm:$0xff]  ;;  %vm454_vm7 = vcmask 1047559   ;;  %vm457_vm8 = vcmask 15360   ;;  %s240_s9 = scalar_lea.vmem [#allocation5], %s579_s17  ;;  %s488_s22 = scalar_lea.sflag [#allocation4], %s880_s13 }
  0x3b   : > { %v259_v2 = vsub.s32 1, %v251_v1  ;;  %v252_v8 = vsub.s32 0, %v251_v1  ;;  %v323_v21 = vsub.s32 2, %v251_v1  ;;  %v330_v23 = vsub.s32 3, %v251_v1  ;;  %v582_v61 = vld [vmem:[%s978_s4] ss:$0 sm:$0xff] }
  0x3c   : > { %v337_v25 = vsub.s32 4, %v251_v1  ;;  %v351_v27 = vsub.s32 6, %v251_v1  ;;  %v358_v29 = vsub.s32 7, %v251_v1  ;;  %v905_v33 = vsub.s32 %v277_v31, %v251_v1  ;;  %s502_s10 = sshll.u32 %s240_s9, 4  ;;  %p988_p11 = scmp.ne.s32.totalorder %s983_s30, 0  ;;  %s932_s10 = int_to_ptr.vmem [resolvable:$true] %s502_s10 }
  0x3d   : > { %v260_v7 = vrot.slane %v248_v5, %v259_v2  ;;  %v253_v9 = vrot.slane %v248_v5, %v252_v8  ;;  %v310_v19 = vrot.slane %v305_v18, %v252_v8  ;;  %v317_v20 = vrot.slane %v305_v18, %v259_v2  ;;  %s674_s17 = scalar_lea.vmem %s932_s10, 256  ;;  %s744_s12 = smov [#allocation5]  }
  0x3e   : > { %v324_v22 = vrot.slane %v305_v18, %v323_v21  ;;  %v331_v24 = vrot.slane %v305_v18, %v330_v23  ;;  %v338_v26 = vrot.slane %v305_v18, %v337_v25  ;;  %v352_v28 = vrot.slane %v305_v18, %v351_v27  ;;  %p675_p6 = scmp.ne.s32.totalorder %s932_s10, %s674_s17  ;;  %s678_s14 = sshll.u32 %s744_s12, 4  ;;  %s679_s14 = int_to_ptr.vmem [resolvable:$false] %s678_s14 }
  0x3f   : > { %262 = vbcast.lane.b32.xlu1 %v260_v7, 256  ;;  %v359_v30 = vrot.slane %v305_v18, %v358_v29  ;;  %v344_v39 = vsub.s32 5, %v251_v1  ;;  %s680_s29 = scalar_lea.vmem %s679_s14, 512  ;;  %p681_p7 = scmp.lt.s32.totalorder %s932_s10, %s679_s14 }
  0x40   : > { %p676_p12 = pnand %p675_p6, %p988_p11  ;;  %p682_p10 = scmp.lt.s32.totalorder %s680_s29, %s674_s17 }
  0x41   : > { %v345_v40 = vrot.slane %v305_v18, %v344_v39 }
  0x42   : > { %p677_p13 = pneg %p676_p12  ;;  %p683_p2 = por %p682_p10, %p681_p7 }
  0x44   : > { %p684_p4 = pnand %p683_p2, %p677_p13 }
  0x50   : > { %255 = vbcast.lane.b32.xlu0 %v253_v9, 256 }
  0x54   : > { %300 = vbcast.lane.b32.xlu0 %v581_v17, 256 }
  0x58   : > { %312 = vbcast.lane.b32.xlu0 %v310_v19, 256 }
  0x5c   : > { %319 = vbcast.lane.b32.xlu0 %v317_v20, 256 }
  0x60   : > { %326 = vbcast.lane.b32.xlu0 %v324_v22, 256 }
  0x64   : > { %333 = vbcast.lane.b32.xlu0 %v331_v24, 256 }
  0x68   : > { %340 = vbcast.lane.b32.xlu0 %v338_v26, 256 }
  0x6c   : > { %354 = vbcast.lane.b32.xlu0 %v352_v28, 256 }
  0x70   : > { %361 = vbcast.lane.b32.xlu0 %v359_v30, 256 }
  0xb1   : > { %v263_v15 = vpop.permute.xlu1 %262 }
  0xc7   : > { %v245_v11 = vpop.xlane.xlu0 %244 }
  0xc8   : > { %v247_v12 = vmul.f32 0.00390625, %v245_v11 }
  0xca   : > { %v267_v16 = vmul.f32 %v263_v15, %v247_v12 }
  0xcb   : > { %v256_v13 = vpop.permute.xlu0 %255 }
  0xcc   : > { %v266_v14 = vmul.f32 %v256_v13, %v247_v12 }
  0xce   : > { %271 = vperm.xlu1 %638, %v266_v14  }
  0xcf   : > { %v301_v41 = vpop.permute.xlu0 %300 }
  0xd2   : > { %274 = vperm.xlu1 %638, %v267_v16  }
  0xd3   : > { %v313_v42 = vpop.permute.xlu0 %312 }
  0xd7   : > { %v320_v43 = vpop.permute.xlu0 %319 }
  0xdb   : > { %v327_v44 = vpop.permute.xlu0 %326 }
  0xdf   : > { %v334_v45 = vpop.permute.xlu0 %333 }
  0xe3   : > { %v341_v48 = vpop.permute.xlu0 %340 }
  0xe7   : > { %v355_v52 = vpop.permute.xlu0 %354 }
  0xeb   : > { %v362_v58 = vpop.permute.xlu0 %361 }
 0x14d   : > { %v272_v32 = vpop.permute.xlu1 %271 }
 0x14e   : > { %v281_v35 = vrot.slane %v272_v32, %v905_v33 }
 0x151   : > { %v275_v34 = vpop.permute.xlu1 %274 }
 0x152   : > { %v285_v36 = vrot.slane %v275_v34, %v905_v33 }
 0x154   : > { %v287_v37 = vsel %vm286_vm0, %v285_v36, %v281_v35 }
 0x155   : > { %v290_v38 = vsel %vm289_vm1, %v287_v37, 0.0 }
 0x156   : > { %291 = vadd.xlane.f32.xlu1 %v290_v38 }
 0x167   : > { %347 = vbcast.lane.b32.xlu1 %v345_v40, 256 }
 0x1e3   : > { %v292_v46 = vpop.xlane.xlu1 %291 }
 0x1e4   : > { %v303_v47 = vadd.f32 %v301_v41, %v292_v46 }
 0x1e6   : > { %v304_v49 = vmax.f32 %v303_v47, 0.0 }
 0x1e7   : > { %v348_v55 = vpop.permute.xlu1 %347 }
 0x1e8   : > { %v371_v50 = vmul.f32 %v313_v42, %v304_v49  ;;  %v372_v51 = vmul.f32 %v320_v43, %v304_v49  ;;  %v373_v53 = vmul.f32 %v327_v44, %v304_v49  ;;  %v374_v54 = vmul.f32 %v334_v45, %v304_v49 }
 0x1e9   : > { %v375_v56 = vmul.f32 %v341_v48, %v304_v49  ;;  %v376_v57 = vmul.f32 %v348_v55, %v304_v49  ;;  %v377_v59 = vmul.f32 %v355_v52, %v304_v49  ;;  %v378_v60 = vmul.f32 %v362_v58, %v304_v49 }
 0x1ea   : > { %388 = vperm.xlu0 %639, %v371_v50   ;;  %391 = vperm.xlu1 %638, %v372_v51  }
 0x1ee   : > { %394 = vperm.xlu0 %639, %v373_v53   ;;  %397 = vperm.xlu1 %638, %v374_v54  }
 0x1f2   : > { %400 = vperm.xlu0 %639, %v375_v56   ;;  %403 = vperm.xlu1 %638, %v376_v57  }
 0x1f6   : > { %406 = vperm.xlu0 %639, %v377_v59   ;;  %409 = vperm.xlu1 %638, %v378_v60  }
 0x1fa   : > { %468 = vbcast.lane.b32.xlu1 %v582_v61, 256 }
 0x269   : > { %v389_v62 = vpop.permute.xlu0 %388  ;;  %v392_v63 = vpop.permute.xlu1 %391 }
 0x26a   : > { %v418_v0 = vrot.slane %v392_v63, %v905_v33  ;;  %v414_v1 = vrot.slane %v389_v62, %v905_v33 }
 0x26c   : > { %v443_v7 = vsel %vm286_vm0, %v418_v0, %v414_v1 }
 0x26d   : > { %v395_v2 = vpop.permute.xlu0 %394  ;;  %v398_v5 = vpop.permute.xlu1 %397 }
 0x26e   : > { %v422_v6 = vrot.slane %v395_v2, %v905_v33  ;;  %v426_v8 = vrot.slane %v398_v5, %v905_v33 }
 0x270   : > { %v445_v9 = vsel %vm444_vm2, %v422_v6, %v443_v7 }
 0x271   : > { %v401_v10 = vpop.permute.xlu0 %400  ;;  %v404_v11 = vpop.permute.xlu1 %403  ;;  %v447_v14 = vsel %vm446_vm3, %v426_v8, %v445_v9 }
 0x272   : > { %v430_v12 = vrot.slane %v401_v10, %v905_v33  ;;  %v434_v13 = vrot.slane %v404_v11, %v905_v33 }
 0x274   : > { %v449_v15 = vsel %vm448_vm4, %v430_v12, %v447_v14 }
 0x275   : > { %v407_v16 = vpop.permute.xlu0 %406  ;;  %v410_v17 = vpop.permute.xlu1 %409  ;;  %v451_v20 = vsel %vm450_vm5, %v434_v13, %v449_v15 }
 0x276   : > { %v438_v18 = vrot.slane %v407_v16, %v905_v33  ;;  %v442_v19 = vrot.slane %v410_v17, %v905_v33 }
 0x278   : > { %v453_v21 = vsel %vm452_vm6, %v438_v18, %v451_v20 }
 0x279   : > { %v455_v22 = vsel %vm454_vm7, %v442_v19, %v453_v21  ;;  %v469_v24 = vpop.permute.xlu1 %468 }
 0x27a   : > { %v458_v23 = vsel %vm457_vm8, %v455_v22, 0.0 }
 0x27b   : > { %459 = vadd.xlane.f32.xlu0 %v458_v23 }
 0x308   : > { %v460_v25 = vpop.xlane.xlu0 %459 }
 0x309   : > { %v471_v26 = vadd.f32 %v469_v24, %v460_v25 }
 0x30b   : > { %v583_v27 = vmul.f32 -1.442695, %v471_v26 }
 0x30d   : > { %640 = vpow2.f32 %v583_v27 }
 0x317   : > { %v641_v28 = vpop.eup %640 }
 0x318   : > { %v475_v29 = vadd.f32 1.0, %v641_v28 }
 0x31a   : > { %642 = vrcp.f32 %v475_v29 }
 0x324   : > { %v643_v30 = vpop.eup %642 }
 0x325   : > { %480 = vperm.xlu1 %638, %v643_v30  }
 0x3a4   : > { %v481_v31 = vpop.permute.xlu1 %480 }
 0x3a5   : > { %v483_v32 = vmul.f32 %v481_v31, %v890_v3  ;;  %v484_v33 = vmul.f32 %v481_v31, %v892_v4 }
 0x3a7   : > { %485 = vst [vmem:[%s240_s9] sm:$0xff] %v483_v32  ;;  %486 = vst [vmem:[%s240_s9 + $0x8] sm:$0xff] %v484_v33 }
 0x3a8   : > { %687 = shalt.err (!%p684_p4)
}
 0x3a9   : > { %s688_s13 = scalar_lea.hbm %s930_s15, 256  ;;  %s692_s26 = scalar_lea.hbm %s979_s5, 512 }
 0x3aa   : > { %p689_p5 = scmp.ne.s32.totalorder %s930_s15, %s688_s13  ;;  %p693_p0 = scmp.lt.u32.totalorder %s930_s15, %s979_s5 }
 0x3ab   : > { %p694_p1 = scmp.lt.u32.totalorder %s692_s26, %s688_s13  ;;  %p696_p6 = scmp.lt.u32.totalorder %s688_s13, %s930_s15 }
 0x3ac   : > { %p690_p8 = pnand %p689_p5, %p988_p11 }
 0x3ad   : > { %p695_p3 = por %p694_p1, %p693_p0 }
 0x3ae   : > { %p691_p9 = pneg %p690_p8 }
 0x3af   : > { %p697_p12 = por %p696_p6, %p695_p3 }
 0x3b1   : > { %p698_p13 = pnand %p697_p12, %p691_p9 }
 0x3b3   : > { %701 = shalt.err (!%p698_p13)
}
 0x3b4   : > { %593 = dma.vmem_to_hbm [thread:$0]  (%p988_p11), %s932_s10, 256, %s930_s15, %s488_s22  }
 0x3b5 PF: > { %s514_s7 = sand.u32 1, %s728_s18   ;;  %p989_p7 = scmp.ne.s32.totalorder %s984_s6, 0 }
 0x3b6   : > { %p990_p10 = scmp.ge.s32.totalorder %s740_s21, 2  ;;  %s515_s9 = scalar_lea.sflag [#allocation4], %s514_s7 }
 0x3b8   : > { %p600_p2 = pnand %p990_p10, %p989_p7 }
 0x3ba   : > { %723 = dma.done.wait (!%p600_p2), %s515_s9, 256  }
 0x3bb   : > { %725 = vsyncadd (!%p600_p2), %s515_s9, 4294967040  ;;  %p18_p4 = scmp.ge.s32.totalorder %s800_s24, 4   ;;  %s991_s18 = smov %s732_s19 }
 0x3bc   : > { %s992_s19 = smov %s736_s20  ;;  %s993_s20 = smov %s812_s27 }
 0x3bd   : > { %s994_s21 = smov %s800_s24  ;;  %20 = sbr.rel (!%p18_p4) target bundleno = 5 (0x5), region = 85 }
 0x3c4   :  { %520 = vsyncpa [#allocation3], 1 }
 0x3c5   :  { %522 = vsyncpa [#allocation3 + $0x1], 1 }
 0x3c6   :  { %523 = vsyncpa [#allocation4], 1 }
 0x3c7   :  { %525 = vsyncpa [#allocation4 + $0x1], 1 }

</bundles_post_ra>
